<compile_context>
chip_gen: v6e
topology: v6e:2x2x1
jax: 0.10.0
libtpu: 0.0.40
codegen_flags: <defaults>
</compile_context>

<pallas_src>
import functools

import jax
import jax.numpy as jnp
from jax import lax
from jax.experimental import pallas as pl
from jax.experimental.pallas import tpu as pltpu


def _round_up(x: int, m: int) -> int:
    return (x + m - 1) // m * m


def _vmem_limits():
    """Returns (vmem_limit_bytes, working-set budget) valid on v5e/v6e/v7x."""
    try:
        cap = pltpu.get_tpu_info().vmem_capacity_bytes
    except Exception:   # non-TPU backend / interpret mode: assume the smallest (v7x)
        cap = 64 << 20
    limit = min(cap, 128 << 20) * 7 // 8      # leave headroom below physical VMEM
    return limit, limit // 2


# --------------------------- Gram kernel: G = X X^T --------------------------

def _make_gram_kernel(D: int, tk: int, ragged: bool, normalize: bool):
    def kernel(fs_ref, ft_ref, gs_ref, gt_ref):
        k = pl.program_id(0)

        @pl.when(k == 0)
        def _init():
            gs_ref[...] = jnp.zeros_like(gs_ref)
            gt_ref[...] = jnp.zeros_like(gt_ref)

        xs = fs_ref[...]
        xt = ft_ref[...]
        if ragged:
            # Handle the ragged remainder of D in VMEM (mask columns >= D)
            # instead of zero-padding the features in HBM.
            col = lax.broadcasted_iota(jnp.int32, xs.shape, 1) + k * tk
            valid = col < D
            xs = jnp.where(valid, xs, 0.0)
            xt = jnp.where(valid, xt, 0.0)

        # X_blk @ X_blk^T by contracting the last (feature) dim of the same VMEM
        # block against itself -> no transposed copy is ever materialized.
        # Kept in f32 (no bf16 cast): the ridge inverse downstream is sensitive
        # to gram roundoff.
        dims = (((1,), (1,)), ((), ()))
        gs_ref[...] += lax.dot_general(xs, xs, dims,
                                       preferred_element_type=jnp.float32)
        gt_ref[...] += lax.dot_general(xt, xt, dims,
                                       preferred_element_type=jnp.float32)

        if normalize:
            # Fold F.normalize(X, dim=1) into the final K step:
            #   G'_ij = G_ij / (max(||x_i||, eps) * max(||x_j||, eps)).
            @pl.when(k == pl.num_programs(0) - 1)
            def _rescale():
                for g_ref in (gs_ref, gt_ref):
                    g = g_ref[...]
                    b = g.shape[0]
                    rows = lax.broadcasted_iota(jnp.int32, (b, b), 0)
                    cols = lax.broadcasted_iota(jnp.int32, (b, b), 1)
                    diag = jnp.where(rows == cols, g, 0.0)
                    # ||x_i||^2 as a (B,1) column and a (1,B) row (no transpose),
                    # clamped at 0 before sqrt.
                    sq_col = jnp.maximum(jnp.sum(diag, axis=1, keepdims=True), 0.0)
                    sq_row = jnp.maximum(jnp.sum(diag, axis=0, keepdims=True), 0.0)
                    n_col = jnp.maximum(jnp.sqrt(sq_col), 1e-12)
                    n_row = jnp.maximum(jnp.sqrt(sq_row), 1e-12)
                    g_ref[...] = g / (n_col * n_row)

    return kernel


def pallas_grams(f_s, f_t, normalize: bool):
    """f_s, f_t: (B, D) f32 -> (G_s, G_t): (B, B) f32 in a single pallas_call."""
    B, D = f_s.shape
    limit, budget = _vmem_limits()

    Dp = _round_up(D, 128)
    # Largest 128-multiple K tile fitting the VMEM working set:
    # 2 inputs x 2 pipeline buffers x (B, tk) f32 + 2 resident (B, B) outputs.
    tk_cap = max(128, ((budget - 16 * B * B) // (16 * B)) // 128 * 128)
    tk = min(Dp, tk_cap)
    nk = pl.cdiv(D, tk)
    ragged = (D % tk) != 0

    kernel = _make_gram_kernel(D, tk, ragged, normalize)
    return pl.pallas_call(
        kernel,
        out_shape=(jax.ShapeDtypeStruct((B, B), jnp.float32),
                   jax.ShapeDtypeStruct((B, B), jnp.float32)),
        grid_spec=pltpu.PrefetchScalarGridSpec(
            num_scalar_prefetch=0,
            grid=(nk,),                                    # feature (K) reduction
            in_specs=[pl.BlockSpec((B, tk), lambda k: (0, k)),
                      pl.BlockSpec((B, tk), lambda k: (0, k))],
            out_specs=(pl.BlockSpec((B, B), lambda k: (0, 0)),
                       pl.BlockSpec((B, B), lambda k: (0, 0)))),
        compiler_params=pltpu.CompilerParams(
            dimension_semantics=("arbitrary",),            # reduction axis
            vmem_limit_bytes=limit),
    )(f_s, f_t)


# ------------------- Fused hat-matrix products + loss ------------------------

def _hat_loss_kernel(gs_ref, gt_ref, inv_s_ref, inv_t_ref, loss_ref):
    h_s = jnp.dot(gs_ref[...], inv_s_ref[...], preferred_element_type=jnp.float32)
    h_t = jnp.dot(gt_ref[...], inv_t_ref[...], preferred_element_type=jnp.float32)
    d = h_s - h_t
    n = d.shape[0] * d.shape[1]
    loss_ref[0, 0] = jnp.sum(d * d) * (1.0 / n)


def pallas_hat_loss(g_s, g_t, inv_s, inv_t):
    """Fused H_s = G_s inv_s, H_t = G_t inv_t, loss = mean((H_s-H_t)^2)."""
    limit, _ = _vmem_limits()
    # Grid-less call: each (B,B) operand lands in VMEM exactly once (no
    # double-buffering for a single step); the scalar loss is written to SMEM.
    # TODO(synk): for very large B, tile this over output rows with a reduction
    # grid axis instead of holding four full (B,B) operands in VMEM.
    out = pl.pallas_call(
        _hat_loss_kernel,
        out_shape=jax.ShapeDtypeStruct((1, 1), jnp.float32),
        in_specs=[pl.BlockSpec(memory_space=pltpu.MemorySpace.VMEM)] * 4,
        out_specs=pl.BlockSpec(memory_space=pltpu.MemorySpace.SMEM),
        compiler_params=pltpu.CompilerParams(vmem_limit_bytes=limit),
    )(g_s, g_t, inv_s, inv_t)
    return out[0, 0]


# -------------------------------- PRD forward --------------------------------

@functools.partial(
    jax.jit, static_argnames=("primal_or_dual", "ridge_prefactor", "normalize"))
def prd_forward(f_s, f_t, primal_or_dual="dual", ridge_prefactor=0.1,
                normalize=False):
    assert primal_or_dual in {"primal", "dual"}
    assert ridge_prefactor > 0
    B = f_s.shape[0]
    f_s = f_s.reshape(B, -1).astype(jnp.float32)
    f_t = f_t.reshape(B, -1).astype(jnp.float32)

    # Student & teacher grams (normalization folded in): one pallas_call that
    # streams the features straight from HBM (no stack / pad round trip).
    g_s, g_t = pallas_grams(f_s, f_t, normalize)

    # Push-through identity: X (X^T X + cI)^{-1} X^T == X X^T (X X^T + cI)^{-1},
    # so both 'primal' and 'dual' reduce to the dual (B x B) hat form (same
    # result up to roundoff, no O(D^3) inverse).
    ridge = jnp.float32(ridge_prefactor) * jnp.eye(B, dtype=jnp.float32)
    # TODO(synk): the (B,B) LU inverse has no clean Pallas equivalent; plain JAX.
    inv_s = jnp.linalg.inv(g_s + ridge)
    inv_t = jnp.linalg.inv(g_t + ridge)

    # Fused hat products + squared-difference mean; H_s/H_t never touch HBM.
    return pallas_hat_loss(g_s, g_t, inv_s, inv_t)


# ----------------------------- pure-JAX reference ----------------------------

def _l2_normalize_rows(x, eps=1e-12):
    norm = jnp.sqrt(jnp.sum(x * x, axis=1, keepdims=True))
    return x / jnp.maximum(norm, eps)


def _prd_ref(f_s, f_t, primal_or_dual, c, normalize):
    """Spec-literal reference ('primal' really inverts the D x D matrix)."""
    with jax.default_matmul_precision("highest"):
        B = f_s.shape[0]
        f_s = f_s.reshape(B, -1).astype(jnp.float32)
        f_t = f_t.reshape(B, -1).astype(jnp.float32)
        if normalize:
            f_s = _l2_normalize_rows(f_s)
            f_t = _l2_normalize_rows(f_t)

        def hat(X):
            if primal_or_dual == "primal":
                D = X.shape[1]
                return X @ jnp.linalg.inv(
                    X.T @ X + c * jnp.eye(D, dtype=jnp.float32)) @ X.T
            G = X @ X.T
            return G @ jnp.linalg.inv(G + c * jnp.eye(B, dtype=jnp.float32))

        d = hat(f_s) - hat(f_t)
        return jnp.mean(d * d)


# ------------------------------------ main ------------------------------------

if __name__ == "__main__":
    key = jax.random.PRNGKey(0)
    k1, k2, k3, k4 = jax.random.split(key, 4)

    # Student / teacher features: NCHW (8, 4, 16, 16) -> flattened (8, 1024).
    f_s = jax.random.normal(k1, (8, 4, 16, 16), dtype=jnp.float32)
    f_t = jax.random.normal(k2, (8, 4, 16, 16), dtype=jnp.float32)

    # dual mode, un-normalized features (ridge comparable to the gram scale so
    # the hat matrices are not degenerate near-identities).
    loss = prd_forward(f_s, f_t, "dual", 100.0, normalize=False)
    jax.block_until_ready(loss)
    ref = _prd_ref(f_s, f_t, "dual", 100.0, normalize=False)
    assert jnp.allclose(loss, ref, rtol=1e-2, atol=1e-9), (loss, ref)

    # primal mode with row normalization.  Kernel uses the push-through
    # identity (dual form); the reference really inverts the 1024x1024 matrix.
    loss = prd_forward(f_s, f_t, "primal", 0.1, normalize=True)
    jax.block_until_ready(loss)
    ref = _prd_ref(f_s, f_t, "primal", 0.1, normalize=True)
    assert jnp.allclose(loss, ref, rtol=2e-2, atol=1e-8), (loss, ref)

    # ragged feature dim (D = 3*7*7 = 147, not a multiple of 128): exercises the
    # in-kernel column mask and the in-kernel normalization rescale.
    g_s = jax.random.normal(k3, (8, 3, 7, 7), dtype=jnp.float32)
    g_t = jax.random.normal(k4, (8, 3, 7, 7), dtype=jnp.float32)
    loss = prd_forward(g_s, g_t, "dual", 0.1, normalize=True)
    jax.block_until_ready(loss)
    ref = _prd_ref(g_s, g_t, "dual", 0.1, normalize=True)
    assert jnp.allclose(loss, ref, rtol=2e-2, atol=1e-8), (loss, ref)

    print("KERNEL_OK")
</pallas_src>

<mosaic_0001>
module attributes {stable_mosaic.version = 11 : i64} {
  func.func @kernel(%arg0: i32, %arg1: memref<8x1024xf32, #tpu.memory_space<vmem>>, %arg2: memref<8x1024xf32, #tpu.memory_space<vmem>>, %arg3: memref<8x8xf32, #tpu.memory_space<vmem>>, %arg4: memref<8x8xf32, #tpu.memory_space<vmem>>) attributes {dimension_semantics = [#tpu.dimension_semantics<arbitrary>], iteration_bounds = array<i64: 1>, scalar_prefetch = 0 : i64, scratch_operands = 0 : i64, tpu.core_type = #tpu.core_type<tc>, window_params = [{transform_indices = @transform_0, window_bounds = array<i64: 8, 1024>}, {transform_indices = @transform_1, window_bounds = array<i64: 8, 1024>}, {pipeline_mode = #tpu.pipeline_mode<synchronous>, transform_indices = @transform_2, window_bounds = array<i64: 8, 8>}, {pipeline_mode = #tpu.pipeline_mode<synchronous>, transform_indices = @transform_3, window_bounds = array<i64: 8, 8>}]} {
    %c0_i32 = arith.constant 0 : i32
    %0 = arith.cmpi eq, %arg0, %c0_i32 : i32
    %1 = arith.extui %0 : i1 to i32
    %c0_i32_0 = arith.constant 0 : i32
    %2 = arith.cmpi ne, %1, %c0_i32_0 : i32
    scf.if %2 {
      %cst_13 = arith.constant 0.000000e+00 : f32
      %13 = vector.broadcast %cst_13 : f32 to vector<8x8xf32>
      %c0_14 = arith.constant 0 : index
      %c0_15 = arith.constant 0 : index
      %14 = vector.load %arg3[%c0_14, %c0_15] : memref<8x8xf32, #tpu.memory_space<vmem>>, vector<8x8xf32>
      tpu.vector_store %arg3[%c0_14, %c0_15], %13 {strides = array<i32>} : memref<8x8xf32, #tpu.memory_space<vmem>>, vector<8x8xf32>,
      %cst_16 = arith.constant 0.000000e+00 : f32
      %15 = vector.broadcast %cst_16 : f32 to vector<8x8xf32>
      %c0_17 = arith.constant 0 : index
      %c0_18 = arith.constant 0 : index
      %16 = vector.load %arg4[%c0_17, %c0_18] : memref<8x8xf32, #tpu.memory_space<vmem>>, vector<8x8xf32>
      tpu.vector_store %arg4[%c0_17, %c0_18], %15 {strides = array<i32>} : memref<8x8xf32, #tpu.memory_space<vmem>>, vector<8x8xf32>,
    } else {
    }
    %c0 = arith.constant 0 : index
    %c0_1 = arith.constant 0 : index
    %3 = vector.load %arg1[%c0, %c0_1] : memref<8x1024xf32, #tpu.memory_space<vmem>>, vector<8x1024xf32>
    %c0_2 = arith.constant 0 : index
    %c0_3 = arith.constant 0 : index
    %4 = vector.load %arg2[%c0_2, %c0_3] : memref<8x1024xf32, #tpu.memory_space<vmem>>, vector<8x1024xf32>
    %c0_4 = arith.constant 0 : index
    %c0_5 = arith.constant 0 : index
    %5 = vector.load %arg3[%c0_4, %c0_5] : memref<8x8xf32, #tpu.memory_space<vmem>>, vector<8x8xf32>
    %cst = arith.constant dense<0.000000e+00> : vector<8x8xf32>
    %6 = tpu.matmul %3, %3, %cst {dimension_numbers = #tpu.dot_dimension_numbers<[1], [1], [0], [0], [0, 0, 1, 0], [], []>} : vector<8x1024xf32>, vector<8x1024xf32>, vector<8x8xf32> -> vector<8x8xf32>
    %7 = arith.addf %5, %6 : vector<8x8xf32>
    %c0_6 = arith.constant 0 : index
    %c0_7 = arith.constant 0 : index
    %8 = vector.load %arg3[%c0_6, %c0_7] : memref<8x8xf32, #tpu.memory_space<vmem>>, vector<8x8xf32>
    tpu.vector_store %arg3[%c0_6, %c0_7], %7 {strides = array<i32>} : memref<8x8xf32, #tpu.memory_space<vmem>>, vector<8x8xf32>,
    %c0_8 = arith.constant 0 : index
    %c0_9 = arith.constant 0 : index
    %9 = vector.load %arg4[%c0_8, %c0_9] : memref<8x8xf32, #tpu.memory_space<vmem>>, vector<8x8xf32>
    %cst_10 = arith.constant dense<0.000000e+00> : vector<8x8xf32>
    %10 = tpu.matmul %4, %4, %cst_10 {dimension_numbers = #tpu.dot_dimension_numbers<[1], [1], [0], [0], [0, 0, 1, 0], [], []>} : vector<8x1024xf32>, vector<8x1024xf32>, vector<8x8xf32> -> vector<8x8xf32>
    %11 = arith.addf %9, %10 : vector<8x8xf32>
    %c0_11 = arith.constant 0 : index
    %c0_12 = arith.constant 0 : index
    %12 = vector.load %arg4[%c0_11, %c0_12] : memref<8x8xf32, #tpu.memory_space<vmem>>, vector<8x8xf32>
    tpu.vector_store %arg4[%c0_11, %c0_12], %11 {strides = array<i32>} : memref<8x8xf32, #tpu.memory_space<vmem>>, vector<8x8xf32>,
    return
  }
  func.func @transform_0(%arg0: i32) -> (i32, i32) {
    %c0_i32 = arith.constant 0 : i32
    %c0_i32_0 = arith.constant 0 : i32
    return %c0_i32, %arg0 : i32, i32
  }
  func.func @transform_1(%arg0: i32) -> (i32, i32) {
    %c0_i32 = arith.constant 0 : i32
    %c0_i32_0 = arith.constant 0 : i32
    return %c0_i32, %arg0 : i32, i32
  }
  func.func @transform_2(%arg0: i32) -> (i32, i32) {
    %c0_i32 = arith.constant 0 : i32
    %c0_i32_0 = arith.constant 0 : i32
    %c0_i32_1 = arith.constant 0 : i32
    return %c0_i32, %c0_i32_0 : i32, i32
  }
  func.func @transform_3(%arg0: i32) -> (i32, i32) {
    %c0_i32 = arith.constant 0 : i32
    %c0_i32_0 = arith.constant 0 : i32
    %c0_i32_1 = arith.constant 0 : i32
    return %c0_i32, %c0_i32_0 : i32, i32
  }
}

module attributes {stable_mosaic.version = 11 : i64} {
  func.func @_hat_loss_kernel(%arg0: memref<8x8xf32, #tpu.memory_space<vmem>>, %arg1: memref<8x8xf32, #tpu.memory_space<vmem>>, %arg2: memref<8x8xf32, #tpu.memory_space<vmem>>, %arg3: memref<8x8xf32, #tpu.memory_space<vmem>>, %arg4: memref<1x1xf32, #tpu.memory_space<smem>>) attributes {dimension_semantics = [], scalar_prefetch = 0 : i64, scratch_operands = 0 : i64, tpu.core_type = #tpu.core_type<tc>} {
    %c0 = arith.constant 0 : index
    %c0_0 = arith.constant 0 : index
    %0 = vector.load %arg0[%c0, %c0_0] : memref<8x8xf32, #tpu.memory_space<vmem>>, vector<8x8xf32>
    %c0_1 = arith.constant 0 : index
    %c0_2 = arith.constant 0 : index
    %1 = vector.load %arg2[%c0_1, %c0_2] : memref<8x8xf32, #tpu.memory_space<vmem>>, vector<8x8xf32>
    %cst = arith.constant dense<0.000000e+00> : vector<8x8xf32>
    %2 = tpu.matmul %0, %1, %cst {dimension_numbers = #tpu.dot_dimension_numbers<[1], [0], [0], [1], [0, 0, 1, 1], [], []>} : vector<8x8xf32>, vector<8x8xf32>, vector<8x8xf32> -> vector<8x8xf32>
    %c0_3 = arith.constant 0 : index
    %c0_4 = arith.constant 0 : index
    %3 = vector.load %arg1[%c0_3, %c0_4] : memref<8x8xf32, #tpu.memory_space<vmem>>, vector<8x8xf32>
    %c0_5 = arith.constant 0 : index
    %c0_6 = arith.constant 0 : index
    %4 = vector.load %arg3[%c0_5, %c0_6] : memref<8x8xf32, #tpu.memory_space<vmem>>, vector<8x8xf32>
    %cst_7 = arith.constant dense<0.000000e+00> : vector<8x8xf32>
    %5 = tpu.matmul %3, %4, %cst_7 {dimension_numbers = #tpu.dot_dimension_numbers<[1], [0], [0], [1], [0, 0, 1, 1], [], []>} : vector<8x8xf32>, vector<8x8xf32>, vector<8x8xf32> -> vector<8x8xf32>
    %6 = arith.subf %2, %5 : vector<8x8xf32>
    %7 = arith.mulf %6, %6 : vector<8x8xf32>
    %8 = vector.shape_cast %7 : vector<8x8xf32> to vector<1x8x8xf32>
    %cst_8 = arith.constant dense<0.000000e+00> : vector<1xf32>
    %9 = vector.multi_reduction <add>, %8, %cst_8 [1, 2] : vector<1x8x8xf32> to vector<1xf32>
    %10 = vector.shape_cast %9 : vector<1xf32> to vector<1x1x1xf32>
    %11 = vector.extract %10[0, 0, 0] : f32 from vector<1x1x1xf32>
    %cst_9 = arith.constant 1.562500e-02 : f32
    %12 = arith.mulf %11, %cst_9 : f32
    %c0_10 = arith.constant 0 : index
    %c0_11 = arith.constant 0 : index
    %13 = memref.load %arg4[%c0_10, %c0_11] : memref<1x1xf32, #tpu.memory_space<smem>>
    memref.store %12, %arg4[%c0_10, %c0_11] : memref<1x1xf32, #tpu.memory_space<smem>>
    return
  }
}

</mosaic_0001>

<bundles_post_ra>
// kernel: custom-call.14
= control target key start
LH: loop header
LB: loop body
LE: loop exit
PB: predicated region body
PF: predicated region fallthrough
CT: control target
= control target key end

     0   :  { %5 = vsyncpa [#allocation4], 0  ;;  %s687_s12 = smov [#allocation0]   ;;  %s779_s0 = inlined_call_operand.vmem [shape: f32[8,8], index: 0, kind: input, shape index: {}]   ;;  %s780_s1 = inlined_call_operand.vmem [shape: f32[8,8], index: 1, kind: output, shape index: {0}]   ;;  %s781_s2 = inlined_call_operand.hbm [shape: s32[8], index: 2, kind: output, shape index: {1}]   ;;  %s782_s3 = inlined_call_operand.vmem [shape: s32[8], index: 3, kind: output, shape index: {2}]  }
   0x1   :  { %s691_s15 = smov %s779_s0  }
   0x2 LB: > { %v53_v0 = vld [vmem:[%s693_s15] sm:$0xff]  ;;  %s55_s15 = scalar_lea.vmem %s693_s15, 8   ;;  %s693_s15 = sphi %s691_s15, %s55_s15   ;;  %s689_s12 = sphi %s687_s12, %s56_s12  }
   0x3   : > { %54 = vst [vmem:[%s689_s12] sm:$0xff] %v53_v0  ;;  %s56_s12 = scalar_lea.vmem %s689_s12, 8   ;;  %p50_p0 = scmp.gt.s32.totalorder %s55_s15, %s779_s0 }
   0x4   :  { %v72_v2 = vlaneseq (%p50_p0)  ;;  %v707_v3 = vmov (%p50_p0), 0   ;;  %s739_s18 = smov (%p50_p0), 0  }
   0x5   :  { %52 = sbr.rel (!%p50_p0) target bundleno = 2 (0x2), region = 152  ;;  %71 = vst [vmem:[#allocation2] sm:$0x1] (%p50_p0), %v707_v3 }
   0x6   :  { %v736_v4 = vshrl.u32 (%p50_p0), %v72_v2, 7 }
   0x8   :  { %76 = vst [vmem:[#allocation7] sm:$0xff] (%p50_p0), %v736_v4 }
   0xa   :  { %v69_v1 = vld [vmem:[#allocation0] sm:$0xff] }
   0xb   :  { %70 = vst [vmem:[#allocation1] sm:$0xff] %v69_v1 }
   0xc LB: > { %v745_v7 = vstv %s697_s18  ;;  %s133_s0 = ssub.s32 128, %s697_s18  ;;  %v139_v37 = vand.u32 127, %v72_v2  ;;  %v142_v39 = vld [vmem:[#allocation2] ss:$0 sm:$0xff]  ;;  %s145_s19 = scalar_lea.vmem [#allocation1], %s697_s18  ;;  %s697_s18 = sphi %s739_s18, %s82_s18  }
   0xd   : > { %vm91_vm0 = vcmp.ge.s32.totalorder %v736_v4, %v745_v7  ;;  %s151_s21 = scalar_lea.vmem [#allocation7], %s697_s18  ;;  %vm171_vm13 = vcmp.gt.s32.totalorder %v736_v4, %v745_v7  ;;  %s82_s18 = sadd.s32 1, %s697_s18  }
   0xe   : > { %vm163_vm10 = vcmp.gt.s32.totalorder %v139_v37, %v745_v7  ;;  %vm140_vm11 = vcmp.eq.s32.totalorder %v139_v37, %v745_v7  ;;  %p79_p1 = scmp.ge.s32.totalorder %s82_s18, 8  }
   0xf   : > { %v153_v41 = vld [vmem:[%s151_s21] ss:$0 sm:$0xff]  ;;  %vm175_vm15 = vmand %vm171_vm13, %vm140_vm11  ;;  %s699_s26 = smov (%p79_p1), %s780_s1   ;;  %s703_s27 = smov (%p79_p1), [#allocation1]  }
  0x12   : > { %v87_v5 = vld [vmem:[#allocation1] sm:$0xff]  ;;  %v147_v40 = vld [vmem:[%s145_s19] ss:$0 sm:$0xff] }
  0x13   : > { %v88_v6 = vand.u32 2147483647, %v87_v5 }
  0x15   : > { %vm470_vm1 = vcmp.gt.f32.partialorder %v88_v6, -inf }
  0x16   : > { %vm95_vm2 = vmand %vm91_vm0, %vm470_vm1 }
  0x17   : > { %v96_v8 = vsel %vm95_vm2, %v736_v4, %v745_v7  ;;  %v97_v9 = vsel %vm95_vm2, %v88_v6, -inf }
  0x18   : > { %v98_v10 = vrot.slane %v97_v9, 1  ;;  %v99_v11 = vrot.slane %v96_v8, 1 }
  0x1a   : > { %vm100_vm3 = vcmp.ge.f32.partialorder %v98_v10, %v97_v9  ;;  %v103_v12 = vrot.slane %v98_v10, 1  ;;  %v104_v13 = vrot.slane %v99_v11, 1 }
  0x1b   : > { %v101_v14 = vsel %vm100_vm3, %v98_v10, %v97_v9  ;;  %v102_v15 = vsel %vm100_vm3, %v99_v11, %v96_v8 }
  0x1c   : > { %vm105_vm4 = vcmp.ge.f32.partialorder %v103_v12, %v101_v14  ;;  %v108_v16 = vrot.slane %v103_v12, 1  ;;  %v109_v17 = vrot.slane %v104_v13, 1 }
  0x1d   : > { %v106_v18 = vsel %vm105_vm4, %v103_v12, %v101_v14  ;;  %v107_v19 = vsel %vm105_vm4, %v104_v13, %v102_v15 }
  0x1e   : > { %vm110_vm5 = vcmp.ge.f32.partialorder %v108_v16, %v106_v18  ;;  %v113_v20 = vrot.slane %v108_v16, 1  ;;  %v114_v21 = vrot.slane %v109_v17, 1 }
  0x1f   : > { %v111_v22 = vsel %vm110_vm5, %v108_v16, %v106_v18  ;;  %v112_v23 = vsel %vm110_vm5, %v109_v17, %v107_v19 }
  0x20   : > { %vm115_vm6 = vcmp.ge.f32.partialorder %v113_v20, %v111_v22  ;;  %v118_v24 = vrot.slane %v113_v20, 1  ;;  %v119_v25 = vrot.slane %v114_v21, 1 }
  0x21   : > { %v116_v26 = vsel %vm115_vm6, %v113_v20, %v111_v22  ;;  %v117_v27 = vsel %vm115_vm6, %v114_v21, %v112_v23 }
  0x22   : > { %vm120_vm7 = vcmp.ge.f32.partialorder %v118_v24, %v116_v26  ;;  %v123_v28 = vrot.slane %v118_v24, 1  ;;  %v124_v29 = vrot.slane %v119_v25, 1 }
  0x23   : > { %v121_v30 = vsel %vm120_vm7, %v118_v24, %v116_v26  ;;  %v122_v31 = vsel %vm120_vm7, %v119_v25, %v117_v27 }
  0x24   : > { %vm125_vm8 = vcmp.ge.f32.partialorder %v123_v28, %v121_v30  ;;  %v128_v32 = vrot.slane %v123_v28, 1  ;;  %v129_v33 = vrot.slane %v124_v29, 1 }
  0x25   : > { %v126_v34 = vsel %vm125_vm8, %v123_v28, %v121_v30  ;;  %v127_v35 = vsel %vm125_vm8, %v124_v29, %v122_v31 }
  0x26   : > { %vm130_vm9 = vcmp.ge.f32.partialorder %v128_v32, %v126_v34 }
  0x27   : > { %v132_v36 = vsel %vm130_vm9, %v129_v33, %v127_v35 }
  0x28   : > { %134 = vrot.lane.b32.xlu0 %v132_v36, %s133_s0 }
  0x9a   : > { %v135_v38 = vpop.permute.xlu0 %134 }
  0x9b   : > { %478 = vpush %v135_v38 }
  0xcc   : > { %s479_s20 = spop %478 }
  0xcd   : > { %v141_v42 = vstv %s479_s20  ;;  %s146_s22 = scalar_lea.vmem [#allocation1], %s479_s20  ;;  %s152_s23 = scalar_lea.vmem [#allocation7], %s479_s20 }
  0xce   : > { %v148_v43 = vld [vmem:[%s146_s22] ss:$0 sm:$0xff]  ;;  %v143_v45 = vsel %vm140_vm11, %v141_v42, %v142_v39 }
  0xcf   : > { %v154_v44 = vld [vmem:[%s152_s23] ss:$0 sm:$0xff]  ;;  %149 = vst [vmem:[%s146_s22] sm:$0x1] %v147_v40  ;;  %vm157_vm12 = vcmp.ne.f32.partialorder %v148_v43, 0.0  ;;  %144 = vst [vmem:[#allocation2] sm:$0x1] %v143_v45 }
  0xd0   : > { %155 = vst [vmem:[%s152_s23] sm:$0x1] %v153_v41  ;;  %150 = vst [vmem:[%s145_s19] sm:$0x1] %v148_v43  ;;  %v164_v52 = vsel %vm163_vm10, %v148_v43, 0.0 }
  0xd1   : > { %156 = vst [vmem:[%s151_s21] sm:$0x1] %v154_v44  ;;  %vm158_vm14 = vmand %vm140_vm11, %vm157_vm12 }
  0xd2   : > { %v159_v46 = vsel %vm158_vm14, %v148_v43, 1.0 }
  0xd3   : > { %v172_v47 = vsel %vm171_vm13, %v159_v46, 1.0 }
  0xd4   : > { %603 = vrcp.f32 %v172_v47 }
  0xd6   :  { %v235_v57 = vld [vmem:[#allocation2] sm:$0x1] (%p79_p1) }
  0xd7   : > { %v168_v49 = vld [vmem:[#allocation1] sm:$0xff]  ;;  %238 = vst [vmem:[#allocation3] sm:$0x1] (%p79_p1), %v235_v57 }
  0xd8   :  { %v182_v56 = vld [vmem:[#allocation7] sm:$0xff] (%p79_p1) }
  0xe1   : > { %v604_v48 = vpop.eup %603 }
  0xe2   : > { %v174_v50 = vmul.f32 %v604_v48, %v168_v49 }
  0xe4   : > { %v176_v51 = vsel %vm175_vm15, %v174_v50, 0.0 }
  0xe5   : > { %177 = vadd.xlane.f32.xlu0 %v176_v51 }
 0x112   :  { %198 = vxpose.xlu0.b32.start.end [1/1] (short) (narrow) (%p79_p1), %v182_v56, 8 }
 0x16e   : > { %v178_v53 = vpop.xlane.xlu0 %177 }
 0x16f   : > { %v179_v54 = vmul.f32 %v178_v53, %v164_v52  ;;  %81 = sbr.rel (!%p79_p1) target bundleno = 12 (0xc), region = 163 }
 0x171   : > { %v180_v55 = vsub.f32 %v174_v50, %v179_v54 }
 0x173   : > { %181 = vst [vmem:[#allocation1] sm:$0xff] %v180_v55 }
 0x18e   :  { %v214_v58 = vpop.trf.xlu0 }
 0x18f   :  { %230 = vst [vmem:[#allocation5] sm:$0x1] %v214_v58 }
 0x196   :  { %v243_v59 = vld [vmem:[#allocation5] sm:$0x1] }
 0x197   :  { %246 = vst [vmem:[#allocation6] sm:$0x1] %v243_v59 }
 0x198 LB: > { %v294_v60 = vld [vmem:[%s705_s27] sm:$0xff]  ;;  %s296_s27 = scalar_lea.vmem %s705_s27, 8   ;;  %s705_s27 = sphi %s703_s27, %s296_s27   ;;  %s701_s26 = sphi %s699_s26, %s297_s26  }
 0x199   : > { %295 = vst [vmem:[%s701_s26] sm:$0xff] %v294_v60  ;;  %s297_s26 = scalar_lea.vmem %s701_s26, 8   ;;  %p291_p2 = scmp.gt.s32.totalorder %s296_s27, [#allocation1] }
 0x19a   :  { %s708_s28 = smov (%p291_p2), [#allocation3]  }
 0x19b   :  { %293 = sbr.rel (!%p291_p2) target bundleno = 408 (0x198), region = 185  ;;  %s315_s29 = sshll.u32 (%p291_p2), %s708_s28, 4  ;;  %s316_s29 = int_to_ptr.vmem [resolvable:$true] %s315_s29 }
 0x19c   :  { %s605_s1 = scalar_lea.vmem (%p291_p2), %s316_s29, 16  ;;  %s609_s5 = scalar_lea.vmem (%p291_p2), %s316_s29, 32 }
 0x19d   :  { %p606_p3 = scmp.ne.s32.totalorder (%p291_p2), %s316_s29, %s605_s1  ;;  %p610_p4 = scmp.lt.s32.totalorder (%p291_p2), %s316_s29, %s316_s29 }
 0x19e   :  { %v382_v61 = vld [vmem:[#allocation6] sm:$0x1] (%p291_p2)  ;;  %p611_p5 = scmp.lt.s32.totalorder (%p291_p2), %s609_s5, %s605_s1 }
 0x19f   :  { %383 = vst [vmem:[%s782_s3] sm:$0x1] (%p291_p2), %v382_v61 }
 0x1a0   :  { %p612_p6 = por %p611_p5, %p610_p4 }
 0x1a2   :  { %p613_p7 = pnand %p612_p6, %p606_p3 }
 0x1a4   :  { %616 = shalt.err (!%p613_p7)
}
 0x1a5   :  { %318 = dma.vmem_to_hbm [thread:$0]  %s316_s29, 16, %s781_s2, [#allocation4]  }
 0x1a6   :  { %685 = dma.done.wait [#allocation4], 16  }
 0x1a7   :  { %686 = vsyncadd [#allocation4], 4294967280 }
 0x1a8   :  { %389 = vsyncpa [#allocation4], 1 }

// kernel: custom-call.19
= control target key start
LH: loop header
LB: loop body
LE: loop exit
PB: predicated region body
PF: predicated region fallthrough
CT: control target
= control target key end

     0   :  { %v35_v0 = vlaneseq  ;;  %v182_v9 = vmov -1.0   ;;  %s217_s0 = inlined_call_operand.vmem [shape: f32[1,8,8], index: 0, kind: input, shape index: {}]   ;;  %s218_s1 = inlined_call_operand.vmem [shape: f32[1,8,8], index: 1, kind: output, shape index: {}]  }
   0x1   :  { %v30_v1 = vld [vmem:[%s217_s0] sm:$0xff] }
   0x2   :  { %v196_v2 = vand.u32 127, %v35_v0  ;;  %v39_v3 = vshrl.u32 %v35_v0, 7 }
   0x4   :  { %vm37_vm0 = vcmp.lt.s32.totalorder %v196_v2, 8  ;;  %vm41_vm1 = vcmp.eq.s32.totalorder %v39_v3, %v196_v2  ;;  %vm46_vm2 = vcmp.ge.s32.totalorder %v39_v3, %v196_v2  ;;  %vm60_vm4 = vcmp.eq.s32.totalorder %v196_v2, 0 }
   0x5   :  { %v43_v4 = vsel %vm41_vm1, %v30_v1, 0.0  ;;  %vm47_vm3 = vmand %vm46_vm2, %vm37_vm0  ;;  %vm57_vm5 = vcmp.eq.s32.totalorder %v196_v2, %v39_v3  ;;  %v61_v10 = vsel %vm60_vm4, 1.0, %v182_v9  ;;  %vm68_vm6 = vcmp.eq.s32.totalorder %v196_v2, 1 }
   0x6   :  { %v48_v5 = vsel %vm47_vm3, %v30_v1, 0.0  ;;  %44 = vadd.xlane.f32.xlu0 %v43_v4  ;;  %v62_v11 = vsel %vm57_vm5, %v61_v10, 0.0  ;;  %vm78_vm7 = vcmp.eq.s32.totalorder %v196_v2, 2  ;;  %vm88_vm8 = vcmp.eq.s32.totalorder %v196_v2, 3 }
   0x7   :  { %vm98_vm9 = vcmp.eq.s32.totalorder %v196_v2, 4  ;;  %vm108_vm10 = vcmp.eq.s32.totalorder %v196_v2, 5  ;;  %vm118_vm11 = vcmp.eq.s32.totalorder %v196_v2, 6  ;;  %vm128_vm12 = vcmp.eq.s32.totalorder %v196_v2, 7 }
  0x8f   :  { %v201_v6 = vpop.xlane.xlu0 %44 }
  0x90   :  { %180 = vrcp.f32 %v201_v6  ;;  %vm135_vm13 = vweird.f32 %v201_v6 }
  0x9d   :  { %v181_v7 = vpop.eup %180 }
  0x9e   :  { %v50_v8 = vmul.f32 %v181_v7, %v48_v5 }
  0xa0   :  { %51 = vst [vmem:[#allocation2] sm:$0xff] %v50_v8 }
  0xa7   :  { %v64_v12 = vld [vmem:[#allocation2 + $0x1] ss:$0 sm:$0xff]  ;;  %v74_v15 = vld [vmem:[#allocation2 + $0x2] ss:$0 sm:$0xff]  ;;  %v84_v20 = vld [vmem:[#allocation2 + $0x3] ss:$0 sm:$0xff] }
  0xa8   :  { %v65_v13 = vxor.u32 2147483648, %v64_v12  ;;  %v75_v17 = vxor.u32 2147483648, %v74_v15  ;;  %v85_v22 = vxor.u32 2147483648, %v84_v20  ;;  %v94_v25 = vld [vmem:[#allocation2 + $0x4] ss:$0 sm:$0xff] }
  0xa9   :  { %v95_v27 = vxor.u32 2147483648, %v94_v25  ;;  %v104_v30 = vld [vmem:[#allocation2 + $0x5] ss:$0 sm:$0xff]  ;;  %v114_v35 = vld [vmem:[#allocation2 + $0x6] ss:$0 sm:$0xff] }
  0xaa   :  { %v69_v14 = vmul.f32 %v65_v13, %v62_v11  ;;  %v105_v32 = vxor.u32 2147483648, %v104_v30  ;;  %v115_v37 = vxor.u32 2147483648, %v114_v35  ;;  %v124_v40 = vld [vmem:[#allocation2 + $0x7] ss:$0 sm:$0xff] }
  0xab   :  { %v125_v42 = vxor.u32 2147483648, %v124_v40 }
  0xac   :  { %70 = vadd.xlane.f32.xlu0 %v69_v14 }
 0x135   :  { %v71_v16 = vpop.xlane.xlu0 %70 }
 0x136   :  { %v72_v18 = vsel %vm68_vm6, %v71_v16, %v62_v11 }
 0x137   :  { %v79_v19 = vmul.f32 %v75_v17, %v72_v18 }
 0x139   :  { %80 = vadd.xlane.f32.xlu1 %v79_v19 }
 0x1c2   :  { %v81_v21 = vpop.xlane.xlu1 %80 }
 0x1c3   :  { %v82_v23 = vsel %vm78_vm7, %v81_v21, %v72_v18 }
 0x1c4   :  { %v89_v24 = vmul.f32 %v85_v22, %v82_v23 }
 0x1c6   :  { %90 = vadd.xlane.f32.xlu1 %v89_v24 }
 0x24f   :  { %v91_v26 = vpop.xlane.xlu1 %90 }
 0x250   :  { %v92_v28 = vsel %vm88_vm8, %v91_v26, %v82_v23 }
 0x251   :  { %v99_v29 = vmul.f32 %v95_v27, %v92_v28 }
 0x253   :  { %100 = vadd.xlane.f32.xlu0 %v99_v29 }
 0x2dc   :  { %v101_v31 = vpop.xlane.xlu0 %100 }
 0x2dd   :  { %v102_v33 = vsel %vm98_vm9, %v101_v31, %v92_v28 }
 0x2de   :  { %v109_v34 = vmul.f32 %v105_v32, %v102_v33 }
 0x2e0   :  { %110 = vadd.xlane.f32.xlu1 %v109_v34 }
 0x369   :  { %v111_v36 = vpop.xlane.xlu1 %110 }
 0x36a   :  { %v112_v38 = vsel %vm108_vm10, %v111_v36, %v102_v33 }
 0x36b   :  { %v119_v39 = vmul.f32 %v115_v37, %v112_v38 }
 0x36d   :  { %120 = vadd.xlane.f32.xlu0 %v119_v39 }
 0x3f6   :  { %v121_v41 = vpop.xlane.xlu0 %120 }
 0x3f7   :  { %v122_v43 = vsel %vm118_vm11, %v121_v41, %v112_v38 }
 0x3f8   :  { %v129_v44 = vmul.f32 %v125_v42, %v122_v43 }
 0x3fa   :  { %130 = vadd.xlane.f32.xlu1 %v129_v44 }
 0x483   :  { %v131_v45 = vpop.xlane.xlu1 %130 }
 0x484   :  { %v132_v46 = vsel %vm128_vm12, %v131_v45, %v122_v43 }
 0x485   :  { %v134_v47 = vmul.f32 %v181_v7, %v132_v46 }
 0x487   :  { %v136_v48 = vsel %vm135_vm13, %v132_v46, %v134_v47 }
 0x488   :  { %167 = vst [vmem:[%s218_s1] sm:$0xff] %v136_v48 }

// kernel: prd_forward.2
= control target key start
LH: loop header
LB: loop body
LE: loop exit
PB: predicated region body
PF: predicated region fallthrough
CT: control target
= control target key end

     0   :  { %vm17_vm0 = vcmask 64512   ;;  %v612_v16 = vmov 0.0   ;;  %s703_s0 = inlined_call_operand.vmem [shape: f32[8,1024], index: 0, kind: input, shape index: {}]   ;;  %s704_s1 = inlined_call_operand.vmem [shape: f32[8,1024], index: 1, kind: input, shape index: {}]   ;;  %s705_s2 = inlined_call_operand.vmem [shape: f32[8,8], index: 2, kind: output, shape index: {0}]   ;;  %s706_s3 = inlined_call_operand.vmem [shape: f32[8,8], index: 3, kind: output, shape index: {1}]  }
   0x1   :  { %v21_v0 = vld [vmem:[%s703_s0 + $0x8] sm:$0xff]  ;;  %v20_v1 = vld [vmem:[%s703_s0] sm:$0xff]  ;;  %v23_v2 = vld [vmem:[%s703_s0 + $0x18] sm:$0xff]  ;;  %18 = vst.msk [vmem:[%s705_s2] sm:$0xff] %vm17_vm0, %v612_v16 }
   0x2   :  { %67 = vmatprep.subr.mxu0 %v21_v0  ;;  %137 = vmatprep.subr.mxu1 %v23_v2  ;;  %v22_v3 = vld [vmem:[%s703_s0 + $0x10] sm:$0xff]  ;;  %v25_v4 = vld [vmem:[%s703_s0 + $0x28] sm:$0xff]  ;;  %v27_v5 = vld [vmem:[%s703_s0 + $0x38] sm:$0xff]  ;;  %19 = vst.msk [vmem:[%s706_s3] sm:$0xff] %vm17_vm0, %v612_v16 }
   0x3   :  { %68 = vmatpush1.xpose.msra.mxu0 %v20_v1  ;;  %138 = vmatpush1.xpose.msra.mxu1 %v22_v3  ;;  %v24_v6 = vld [vmem:[%s703_s0 + $0x20] sm:$0xff]  ;;  %v26_v7 = vld [vmem:[%s703_s0 + $0x30] sm:$0xff]  ;;  %v29_v8 = vld [vmem:[%s704_s1 + $0x8] sm:$0xff] }
   0x4   :  { %101 = vmatprep.mubr.f32.mxu0 %v21_v0  ;;  %171 = vmatprep.mubr.f32.mxu1 %v23_v2  ;;  %v31_v9 = vld [vmem:[%s704_s1 + $0x18] sm:$0xff]  ;;  %v28_v10 = vld [vmem:[%s704_s1] sm:$0xff]  ;;  %v30_v11 = vld [vmem:[%s704_s1 + $0x10] sm:$0xff] }
   0x5   :  { %207 = vmatprep.subr.mxu0 %v25_v4  ;;  %277 = vmatprep.subr.mxu1 %v27_v5  ;;  %v33_v12 = vld [vmem:[%s704_s1 + $0x28] sm:$0xff]  ;;  %v35_v13 = vld [vmem:[%s704_s1 + $0x38] sm:$0xff]  ;;  %v32_v14 = vld [vmem:[%s704_s1 + $0x20] sm:$0xff] }
   0x6   :  { %102 = vmatmul.mubr.f32.vlgmr.msra.gmra.mxu0 %v20_v1  ;;  %172 = vmatmul.mubr.f32.vlgmr.msra.gmra.mxu1 %v22_v3  ;;  %v34_v15 = vld [vmem:[%s704_s1 + $0x30] sm:$0xff] }
   0x7   :  { %208 = vmatpush1.xpose.msra.mxu0 %v24_v6  ;;  %278 = vmatpush1.xpose.msra.mxu1 %v26_v7 }
   0x8   :  { %241 = vmatprep.mubr.f32.mxu0 %v25_v4  ;;  %311 = vmatprep.mubr.f32.mxu1 %v27_v5  ;;  %v36_v25 = vld [vmem:[%s705_s2] sm:$0xff] }
   0x9   :  { %351 = vmatprep.subr.mxu0 %v29_v8  ;;  %421 = vmatprep.subr.mxu1 %v31_v9  ;;  %v320_v38 = vld [vmem:[%s706_s3] sm:$0xff] }
   0xa   :  { %242 = vmatmul.mubr.f32.vlgmr.msra.gmra.mxu0 %v24_v6  ;;  %312 = vmatmul.mubr.f32.vlgmr.msra.gmra.mxu1 %v26_v7 }
   0xb   :  { %352 = vmatpush1.xpose.msra.mxu0 %v28_v10  ;;  %422 = vmatpush1.xpose.msra.mxu1 %v30_v11 }
   0xc   :  { %385 = vmatprep.mubr.f32.mxu0 %v29_v8  ;;  %455 = vmatprep.mubr.f32.mxu1 %v31_v9 }
   0xd   :  { %491 = vmatprep.subr.mxu0 %v33_v12  ;;  %561 = vmatprep.subr.mxu1 %v35_v13 }
   0xe   :  { %386 = vmatmul.mubr.f32.vlgmr.msra.gmra.mxu0 %v28_v10  ;;  %456 = vmatmul.mubr.f32.vlgmr.msra.gmra.mxu1 %v30_v11 }
   0xf   :  { %492 = vmatpush1.xpose.msra.mxu0 %v32_v14  ;;  %562 = vmatpush1.xpose.msra.mxu1 %v34_v15 }
  0x10   :  { %525 = vmatprep.mubr.f32.mxu0 %v33_v12  ;;  %595 = vmatprep.mubr.f32.mxu1 %v35_v13 }
  0x12   :  { %526 = vmatmul.mubr.f32.vlgmr.msra.gmra.mxu0 %v32_v14  ;;  %596 = vmatmul.mubr.f32.vlgmr.msra.gmra.mxu1 %v34_v15 }
  0xc6   :  { %v103_v17 = vpop.f32.mrf.mxu0  ;;  %v173_v18 = vpop.f32.mrf.mxu1 }
  0xc7   :  { %v174_v21 = vadd.f32 %v173_v18, %v103_v17 }
  0xc8   :  { %v105_v19 = vpop.f32.mrf.mxu0  ;;  %v175_v20 = vpop.f32.mrf.mxu1 }
  0xca   :  { %v243_v22 = vpop.f32.mrf.mxu0  ;;  %v313_v23 = vpop.f32.mrf.mxu1 }
  0xcb   :  { %v244_v24 = vadd.f32 %v243_v22, %v174_v21 }
  0xcc   :  { %v245_v26 = vpop.f32.mrf.mxu0  ;;  %v315_v27 = vpop.f32.mrf.mxu1 }
  0xcd   :  { %v314_v28 = vadd.f32 %v313_v23, %v244_v24 }
  0xce   :  { %v387_v29 = vpop.f32.mrf.mxu0  ;;  %v457_v30 = vpop.f32.mrf.mxu1 }
  0xcf   :  { %v317_v31 = vadd.f32 %v314_v28, %v36_v25  ;;  %v458_v34 = vadd.f32 %v457_v30, %v387_v29 }
  0xd0   :  { %v389_v32 = vpop.f32.mrf.mxu0  ;;  %v459_v33 = vpop.f32.mrf.mxu1 }
  0xd1   :  { %319 = vst.msk [vmem:[%s705_s2] sm:$0xff] %vm17_vm0, %v317_v31 }
  0xd2   :  { %v527_v35 = vpop.f32.mrf.mxu0  ;;  %v597_v36 = vpop.f32.mrf.mxu1 }
  0xd3   :  { %v528_v37 = vadd.f32 %v527_v35, %v458_v34 }
  0xd4   :  { %v529_v39 = vpop.f32.mrf.mxu0  ;;  %v599_v40 = vpop.f32.mrf.mxu1 }
  0xd5   :  { %v598_v41 = vadd.f32 %v597_v36, %v528_v37 }
  0xd7   :  { %v601_v42 = vadd.f32 %v598_v41, %v320_v38 }
  0xd9   :  { %602 = vst.msk [vmem:[%s706_s3] sm:$0xff] %vm17_vm0, %v601_v42 }

// kernel: custom-call.18
= control target key start
LH: loop header
LB: loop body
LE: loop exit
PB: predicated region body
PF: predicated region fallthrough
CT: control target
= control target key end

     0   :  { %v35_v0 = vlaneseq  ;;  %v181_v9 = vmov -1.0   ;;  %s216_s0 = inlined_call_operand.vmem [shape: f32[1,8,8], index: 0, kind: input, shape index: {}]   ;;  %s217_s1 = inlined_call_operand.vmem [shape: f32[1,8,8], index: 1, kind: output, shape index: {}]  }
   0x1   :  { %v30_v1 = vld [vmem:[%s216_s0] sm:$0xff] }
   0x2   :  { %v195_v2 = vand.u32 127, %v35_v0  ;;  %v39_v3 = vshrl.u32 %v35_v0, 7 }
   0x4   :  { %vm37_vm0 = vcmp.lt.s32.totalorder %v195_v2, 8  ;;  %vm41_vm1 = vcmp.eq.s32.totalorder %v39_v3, %v195_v2  ;;  %vm46_vm2 = vcmp.le.s32.totalorder %v39_v3, %v195_v2  ;;  %vm60_vm4 = vcmp.eq.s32.totalorder %v195_v2, 7 }
   0x5   :  { %v43_v4 = vsel %vm41_vm1, %v30_v1, 0.0  ;;  %vm47_vm3 = vmand %vm46_vm2, %vm37_vm0  ;;  %vm57_vm5 = vcmp.eq.s32.totalorder %v195_v2, %v39_v3  ;;  %v61_v10 = vsel %vm60_vm4, 1.0, %v181_v9  ;;  %vm68_vm6 = vcmp.eq.s32.totalorder %v195_v2, 6 }
   0x6   :  { %v48_v5 = vsel %vm47_vm3, %v30_v1, 0.0  ;;  %44 = vadd.xlane.f32.xlu0 %v43_v4  ;;  %v62_v11 = vsel %vm57_vm5, %v61_v10, 0.0  ;;  %vm78_vm7 = vcmp.eq.s32.totalorder %v195_v2, 5  ;;  %vm88_vm8 = vcmp.eq.s32.totalorder %v195_v2, 4 }
   0x7   :  { %vm98_vm9 = vcmp.eq.s32.totalorder %v195_v2, 3  ;;  %vm108_vm10 = vcmp.eq.s32.totalorder %v195_v2, 2  ;;  %vm118_vm11 = vcmp.eq.s32.totalorder %v195_v2, 1  ;;  %vm127_vm12 = vcmp.eq.s32.totalorder %v195_v2, 0 }
  0x8f   :  { %v200_v6 = vpop.xlane.xlu0 %44 }
  0x90   :  { %179 = vrcp.f32 %v200_v6  ;;  %vm134_vm13 = vweird.f32 %v200_v6 }
  0x9d   :  { %v180_v7 = vpop.eup %179 }
  0x9e   :  { %v50_v8 = vmul.f32 %v180_v7, %v48_v5 }
  0xa0   :  { %51 = vst [vmem:[#allocation2] sm:$0xff] %v50_v8 }
  0xa7   :  { %v64_v12 = vld [vmem:[#allocation2 + $0x6] ss:$0 sm:$0xff]  ;;  %v74_v15 = vld [vmem:[#allocation2 + $0x5] ss:$0 sm:$0xff]  ;;  %v84_v20 = vld [vmem:[#allocation2 + $0x4] ss:$0 sm:$0xff] }
  0xa8   :  { %v65_v13 = vxor.u32 2147483648, %v64_v12  ;;  %v75_v17 = vxor.u32 2147483648, %v74_v15  ;;  %v85_v22 = vxor.u32 2147483648, %v84_v20  ;;  %v94_v25 = vld [vmem:[#allocation2 + $0x3] ss:$0 sm:$0xff] }
  0xa9   :  { %v95_v27 = vxor.u32 2147483648, %v94_v25  ;;  %v104_v30 = vld [vmem:[#allocation2 + $0x2] ss:$0 sm:$0xff]  ;;  %v114_v35 = vld [vmem:[#allocation2 + $0x1] ss:$0 sm:$0xff] }
  0xaa   :  { %v69_v14 = vmul.f32 %v65_v13, %v62_v11  ;;  %v105_v32 = vxor.u32 2147483648, %v104_v30  ;;  %v115_v37 = vxor.u32 2147483648, %v114_v35  ;;  %v123_v40 = vld [vmem:[#allocation2] ss:$0 sm:$0xff] }
  0xab   :  { %v124_v42 = vxor.u32 2147483648, %v123_v40 }
  0xac   :  { %70 = vadd.xlane.f32.xlu0 %v69_v14 }
 0x135   :  { %v71_v16 = vpop.xlane.xlu0 %70 }
 0x136   :  { %v72_v18 = vsel %vm68_vm6, %v71_v16, %v62_v11 }
 0x137   :  { %v79_v19 = vmul.f32 %v75_v17, %v72_v18 }
 0x139   :  { %80 = vadd.xlane.f32.xlu1 %v79_v19 }
 0x1c2   :  { %v81_v21 = vpop.xlane.xlu1 %80 }
 0x1c3   :  { %v82_v23 = vsel %vm78_vm7, %v81_v21, %v72_v18 }
 0x1c4   :  { %v89_v24 = vmul.f32 %v85_v22, %v82_v23 }
 0x1c6   :  { %90 = vadd.xlane.f32.xlu1 %v89_v24 }
 0x24f   :  { %v91_v26 = vpop.xlane.xlu1 %90 }
 0x250   :  { %v92_v28 = vsel %vm88_vm8, %v91_v26, %v82_v23 }
 0x251   :  { %v99_v29 = vmul.f32 %v95_v27, %v92_v28 }
 0x253   :  { %100 = vadd.xlane.f32.xlu0 %v99_v29 }
 0x2dc   :  { %v101_v31 = vpop.xlane.xlu0 %100 }
 0x2dd   :  { %v102_v33 = vsel %vm98_vm9, %v101_v31, %v92_v28 }
 0x2de   :  { %v109_v34 = vmul.f32 %v105_v32, %v102_v33 }
 0x2e0   :  { %110 = vadd.xlane.f32.xlu1 %v109_v34 }
 0x369   :  { %v111_v36 = vpop.xlane.xlu1 %110 }
 0x36a   :  { %v112_v38 = vsel %vm108_vm10, %v111_v36, %v102_v33 }
 0x36b   :  { %v119_v39 = vmul.f32 %v115_v37, %v112_v38 }
 0x36d   :  { %120 = vadd.xlane.f32.xlu0 %v119_v39 }
 0x3f6   :  { %v121_v41 = vpop.xlane.xlu0 %120 }
 0x3f7   :  { %v122_v43 = vsel %vm118_vm11, %v121_v41, %v112_v38 }
 0x3f8   :  { %v128_v44 = vmul.f32 %v124_v42, %v122_v43 }
 0x3fa   :  { %129 = vadd.xlane.f32.xlu1 %v128_v44 }
 0x483   :  { %v130_v45 = vpop.xlane.xlu1 %129 }
 0x484   :  { %v131_v46 = vsel %vm127_vm12, %v130_v45, %v122_v43 }
 0x485   :  { %v133_v47 = vmul.f32 %v180_v7, %v131_v46 }
 0x487   :  { %v135_v48 = vsel %vm134_vm13, %v131_v46, %v133_v47 }
 0x488   :  { %166 = vst [vmem:[%s217_s1] sm:$0xff] %v135_v48 }

// kernel: prd_forward.3
= control target key start
LH: loop header
LB: loop body
LE: loop exit
PB: predicated region body
PF: predicated region fallthrough
CT: control target
= control target key end

     0   :  { %v228_v2 = vmov 0.0   ;;  %vm20_vm0 = vcmask 64512   ;;  %s274_s0 = inlined_call_operand.vmem [shape: f32[8,8], index: 0, kind: input, shape index: {}]   ;;  %s275_s1 = inlined_call_operand.vmem [shape: f32[8,8], index: 1, kind: input, shape index: {}]   ;;  %s276_s2 = inlined_call_operand.vmem [shape: f32[8,8], index: 2, kind: input, shape index: {}]   ;;  %s277_s3 = inlined_call_operand.vmem [shape: f32[8,8], index: 3, kind: input, shape index: {}]   ;;  %s278_s4 = inlined_call_operand.hbm [shape: f32[1,1], index: 4, kind: output, shape index: {}]  }
   0x1   :  { %v19_v0 = vld [vmem:[%s276_s2] sm:$0xff]  ;;  %203 = vmatprep.subr.mxu0 %v228_v2  ;;  %208 = vmatprep.subr.mxu1 %v228_v2 }
   0x2   :  { %v95_v1 = vld [vmem:[%s277_s3] sm:$0xff] }
   0x3   :  { %v18_v3 = vld [vmem:[%s274_s0] sm:$0xff] }
   0x4   :  { %v94_v4 = vld [vmem:[%s275_s1] sm:$0xff] }
   0x5   :  { %9 = vsyncpa [#allocation3], 0  ;;  %204 = vmatpush3.msra.mxu0 %v19_v0  ;;  %vm229_vm1 = vmmov 0   ;;  %209 = vmatpush3.msra.mxu1 %v95_v1  ;;  %s230_s2 = smov [#allocation2]  }
   0x6   :  { %205 = vmatprep.mubr.msk.f32.mxu0 %vm229_vm1, %v228_v2  ;;  %210 = vmatprep.mubr.msk.f32.mxu1 %vm229_vm1, %v228_v2 }
   0x7   :  { %206 = vmatmul.mubr.msk.f32.vlgmr.msra.gmra.mxu0 %vm20_vm0, %v18_v3  ;;  %211 = vmatmul.mubr.msk.f32.vlgmr.msra.gmra.mxu1 %vm20_vm0, %v94_v4 }
  0xc7   :  { %v90_v5 = vpop.f32.mrf.mxu0  ;;  %v165_v6 = vpop.f32.mrf.mxu1 }
  0xc8   :  { %v169_v7 = vsub.f32 %v90_v5, %v165_v6 }
  0xc9   :  { %v207_v8 = vpop.f32.mrf.mxu0  ;;  %v212_v9 = vpop.f32.mrf.mxu1 }
  0xca   :  { %v170_v10 = vmul.f32 %v169_v7, %v169_v7 }
  0xcc   :  { %v171_v11 = vsel %vm20_vm0, %v170_v10, 0.0 }
  0xcd   :  { %172 = vadd.xlane.f32.xlu0 %v171_v11 }
 0x156   :  { %v173_v12 = vpop.xlane.xlu0 %172 }
 0x157   :  { %v174_v13 = vrot.slane %v173_v12, 4 }
 0x159   :  { %v175_v14 = vadd.f32 %v174_v13, %v173_v12 }
 0x15b   :  { %v176_v15 = vrot.slane %v175_v14, 2 }
 0x15d   :  { %v177_v16 = vadd.f32 %v176_v15, %v175_v14 }
 0x15f   :  { %v178_v17 = vrot.slane %v177_v16, 1 }
 0x161   :  { %v179_v18 = vadd.f32 %v178_v17, %v177_v16 }
 0x163   :  { %213 = vpush %v179_v18 }
 0x194   :  { %s214_s0 = spop %213 }
 0x195   :  { %s181_s1 = smul.f32 0.015625, %s214_s0 }
 0x197   :  { %183 = sst [smem:[#allocation2]] %s181_s1 }
 0x198   :  { %191 = dma.smem_to_hbm %s230_s2, 16, %s278_s4, [#allocation3]  }
 0x199   :  { %226 = dma.done.wait [#allocation3], 16  }
 0x19a   :  { %227 = vsyncadd [#allocation3], 4294967280 }
 0x19b   :  { %195 = sfence }
 0x19c   :  { %196 = vsyncpa [#allocation3], 1 }

</bundles_post_ra>
